<compile_context>
chip_gen: v6e
topology: v6e:2x2x1
jax: 0.10.0
libtpu: 0.0.40
codegen_flags: <defaults>
</compile_context>

<pallas_src>
import functools

import jax
import jax.numpy as jnp
from jax.experimental import pallas as pl
from jax.experimental.pallas import tpu as pltpu

LANE = 128
H1_PAD = 512      # 400 -> 512 (multiple of 256: whole MXU passes on v6e/v7x)
H2_PAD = 256      # 200 -> 256
TM_MAX = 512      # max batch rows per grid step
SPLIT_ROWS = 256  # padded batch >= this -> keep >=2 grid steps (v7x megacore)


def _round_up(x, m):
    return (x + m - 1) // m * m


def _batch_tiling(batch):
    """Pick (tm, b_pad) so tiles are fat, the trailing tile is never mostly
    padding, and there are >=2 parallel steps when the batch is large."""
    b8 = _round_up(batch, 8)
    n_tiles = max(1, -(-b8 // TM_MAX))
    if b8 >= SPLIT_ROWS and n_tiles < 2:
        n_tiles = 2                      # let v7x shard the batch axis
    tm = _round_up(-(-b8 // n_tiles), 8)
    b_pad = tm * n_tiles
    return tm, b_pad


def _actor_kernel(x_ref, w1_ref, w2_ref, w3_ref, b_ref, o_ref, *, h1_pad, h2_pad):
    # x_ref:  [tm, S_pad]              bf16  (streamed over the batch grid)
    # w*_ref: padded weights           bf16  (VMEM-resident, constant index_map)
    # b_ref:  [1, h1_pad+h2_pad+A_pad] f32   (packed bias slab, static slices)
    x = x_ref[...]

    b1 = b_ref[:, :h1_pad]
    b2 = b_ref[:, h1_pad:h1_pad + h2_pad]
    b3 = b_ref[:, h1_pad + h2_pad:]

    # Layer 1: Linear(S,400) + ReLU   (bf16 MXU inputs, f32 accumulate)
    h1 = jnp.dot(x, w1_ref[...], preferred_element_type=jnp.float32) + b1
    h1 = jnp.maximum(h1, 0.0)

    # Layer 2: Linear(400,200) + ReLU
    h2 = jnp.dot(h1.astype(jnp.bfloat16), w2_ref[...],
                 preferred_element_type=jnp.float32) + b2
    h2 = jnp.maximum(h2, 0.0)

    # Layer 3: Linear(200,A) + Tanh   (lane-dense [tm, A_pad] store)
    out = jnp.dot(h2.astype(jnp.bfloat16), w3_ref[...],
                  preferred_element_type=jnp.float32) + b3
    o_ref[...] = jnp.tanh(out).astype(o_ref.dtype)


def prepare_actor_params(params):
    """One-time padding / packing of the actor weights.  Call once, reuse the
    result for every forward pass (avoids per-call HBM rewrites)."""
    w1, b1 = params["w1"], params["b1"]   # [S, 400], [1, 400]
    w2, b2 = params["w2"], params["b2"]   # [400, 200], [1, 200]
    w3, b3 = params["w3"], params["b3"]   # [200, A], [1, A]

    S = w1.shape[0]
    A = w3.shape[1]
    s_pad = _round_up(S, LANE)
    a_pad = _round_up(A, LANE)

    def pad2(a, rows, cols, dtype):
        z = jnp.zeros((rows, cols), dtype)
        return z.at[:a.shape[0], :a.shape[1]].set(a.astype(dtype))

    # Zero-padded bf16 weights (padding contributes exactly 0 to the matmuls).
    w1p = pad2(w1, s_pad, H1_PAD, jnp.bfloat16)
    w2p = pad2(w2, H1_PAD, H2_PAD, jnp.bfloat16)
    w3p = pad2(w3, H2_PAD, a_pad, jnp.bfloat16)

    # Single packed f32 bias slab, lane-aligned segments.
    bias = jnp.zeros((1, H1_PAD + H2_PAD + a_pad), jnp.float32)
    bias = bias.at[:, :b1.shape[1]].set(b1)
    bias = bias.at[:, H1_PAD:H1_PAD + b2.shape[1]].set(b2)
    bias = bias.at[:, H1_PAD + H2_PAD:H1_PAD + H2_PAD + b3.shape[1]].set(b3)

    return {
        "w1p": jax.device_put(w1p), "w2p": jax.device_put(w2p),
        "w3p": jax.device_put(w3p), "bias": jax.device_put(bias),
        "state_dim": S, "action_dim": A, "s_pad": s_pad, "a_pad": a_pad,
    }


def lunar_actor_forward(states, prepared):
    """states: [B, state_dim] float32; prepared: output of prepare_actor_params."""
    B, S = states.shape
    assert S == prepared["state_dim"]
    A = prepared["action_dim"]
    s_pad, a_pad = prepared["s_pad"], prepared["a_pad"]
    b_width = H1_PAD + H2_PAD + a_pad

    tm, b_pad = _batch_tiling(B)

    # Zero-pad + cast the activation stream to bf16 in one shot.
    xp = jnp.zeros((b_pad, s_pad), jnp.bfloat16)
    xp = xp.at[:B, :S].set(states.astype(jnp.bfloat16))

    kernel = functools.partial(_actor_kernel, h1_pad=H1_PAD, h2_pad=H2_PAD)

    out_p = pl.pallas_call(
        kernel,
        out_shape=jax.ShapeDtypeStruct((b_pad, a_pad), jnp.float32),
        grid=(b_pad // tm,),
        in_specs=[
            pl.BlockSpec((tm, s_pad), lambda i: (i, 0)),        # activations stream
            pl.BlockSpec((s_pad, H1_PAD), lambda i: (0, 0)),    # weights resident
            pl.BlockSpec((H1_PAD, H2_PAD), lambda i: (0, 0)),
            pl.BlockSpec((H2_PAD, a_pad), lambda i: (0, 0)),
            pl.BlockSpec((1, b_width), lambda i: (0, 0)),       # packed biases
        ],
        out_specs=pl.BlockSpec((tm, a_pad), lambda i: (i, 0)),
        compiler_params=pltpu.CompilerParams(
            dimension_semantics=("parallel",)),
    )(xp, prepared["w1p"], prepared["w2p"], prepared["w3p"], prepared["bias"])

    return out_p[:B, :A]


def init_params(key, state_dim, action_dim):
    """Deterministic synthetic parameters (PyTorch-Linear-like uniform init)."""
    ks = jax.random.split(key, 6)

    def linear(kw, kb, fan_in, fan_out):
        bound = 1.0 / jnp.sqrt(jnp.float32(fan_in))
        w = jax.random.uniform(kw, (fan_in, fan_out), jnp.float32, -bound, bound)
        b = jax.random.uniform(kb, (1, fan_out), jnp.float32, -bound, bound)
        return w, b

    w1, b1 = linear(ks[0], ks[1], state_dim, 400)
    w2, b2 = linear(ks[2], ks[3], 400, 200)
    w3, b3 = linear(ks[4], ks[5], 200, action_dim)
    return {"w1": w1, "b1": b1, "w2": w2, "b2": b2, "w3": w3, "b3": b3}


def _reference_forward(states, p):
    # Mirrors the kernel's precision policy: bf16 matmul inputs, f32 accumulate,
    # f32 bias/ReLU/tanh.
    def lin(x, w, b):
        return jnp.dot(x.astype(jnp.bfloat16), w.astype(jnp.bfloat16),
                       preferred_element_type=jnp.float32) + b

    h1 = jnp.maximum(lin(states, p["w1"], p["b1"]), 0.0)
    h2 = jnp.maximum(lin(h1, p["w2"], p["b2"]), 0.0)
    return jnp.tanh(lin(h2, p["w3"], p["b3"]))


if __name__ == "__main__":
    key = jax.random.PRNGKey(0)
    k_param, k_state = jax.random.split(key)

    batch = 2
    state_dim = 8      # LunarLanderContinuous observation size
    action_dim = 2     # LunarLanderContinuous action size

    params = init_params(k_param, state_dim, action_dim)
    prepared = prepare_actor_params(params)           # one-time padding/packing
    states = jax.random.normal(k_state, (batch, state_dim), jnp.float32)

    out = jax.block_until_ready(lunar_actor_forward(states, prepared))
    ref = jax.block_until_ready(_reference_forward(states, params))

    assert out.shape == (batch, action_dim)
    assert jnp.allclose(out, ref, atol=1e-4, rtol=1e-4), "mismatch vs reference"

    # Also exercise a larger batch that uses multiple (>=2) grid steps.
    big = jax.random.normal(jax.random.PRNGKey(1), (300, state_dim), jnp.float32)
    out_big = jax.block_until_ready(lunar_actor_forward(big, prepared))
    ref_big = jax.block_until_ready(_reference_forward(big, params))
    assert out_big.shape == (300, action_dim)
    assert jnp.allclose(out_big, ref_big, atol=1e-4, rtol=1e-4), "mismatch (big batch)"

    print("KERNEL_OK")
</pallas_src>

<mosaic_0001>
module attributes {stable_mosaic.version = 11 : i64} {
  func.func @_actor_kernel(%arg0: i32, %arg1: memref<8x128xbf16, #tpu.memory_space<vmem>>, %arg2: memref<128x512xbf16, #tpu.memory_space<vmem>>, %arg3: memref<512x256xbf16, #tpu.memory_space<vmem>>, %arg4: memref<256x128xbf16, #tpu.memory_space<vmem>>, %arg5: memref<1x896xf32, #tpu.memory_space<vmem>>, %arg6: memref<8x128xf32, #tpu.memory_space<vmem>>) attributes {dimension_semantics = [#tpu.dimension_semantics<parallel>], iteration_bounds = array<i64: 1>, scalar_prefetch = 0 : i64, scratch_operands = 0 : i64, tpu.core_type = #tpu.core_type<tc>, window_params = [{transform_indices = @transform_0, window_bounds = array<i64: 8, 128>}, {pipeline_mode = #tpu.pipeline_mode<synchronous>, transform_indices = @transform_1, window_bounds = array<i64: 128, 512>}, {pipeline_mode = #tpu.pipeline_mode<synchronous>, transform_indices = @transform_2, window_bounds = array<i64: 512, 256>}, {pipeline_mode = #tpu.pipeline_mode<synchronous>, transform_indices = @transform_3, window_bounds = array<i64: 256, 128>}, {pipeline_mode = #tpu.pipeline_mode<synchronous>, transform_indices = @transform_4, window_bounds = array<i64: 1, 896>}, {transform_indices = @transform_5, window_bounds = array<i64: 8, 128>}]} {
    %c0 = arith.constant 0 : index
    %c0_0 = arith.constant 0 : index
    %0 = vector.load %arg1[%c0, %c0_0] : memref<8x128xbf16, #tpu.memory_space<vmem>>, vector<8x128xbf16>
    %c0_1 = arith.constant 0 : index
    %c0_2 = arith.constant 0 : index
    %1 = vector.load %arg5[%c0_1, %c0_2] : memref<1x896xf32, #tpu.memory_space<vmem>>, vector<1x512xf32>
    %c0_3 = arith.constant 0 : index
    %c512 = arith.constant 512 : index
    %2 = vector.load %arg5[%c0_3, %c512] : memref<1x896xf32, #tpu.memory_space<vmem>>, vector<1x256xf32>
    %c0_4 = arith.constant 0 : index
    %c768 = arith.constant 768 : index
    %3 = vector.load %arg5[%c0_4, %c768] : memref<1x896xf32, #tpu.memory_space<vmem>>, vector<1x128xf32>
    %c0_5 = arith.constant 0 : index
    %c0_6 = arith.constant 0 : index
    %4 = vector.load %arg2[%c0_5, %c0_6] : memref<128x512xbf16, #tpu.memory_space<vmem>>, vector<128x512xbf16>
    %cst = arith.constant dense<0.000000e+00> : vector<8x512xf32>
    %5 = tpu.matmul %0, %4, %cst {dimension_numbers = #tpu.dot_dimension_numbers<[1], [0], [0], [1], [0, 0, 1, 1], [], []>} : vector<8x128xbf16>, vector<128x512xbf16>, vector<8x512xf32> -> vector<8x512xf32>
    %6 = vector.broadcast %1 : vector<1x512xf32> to vector<8x512xf32>
    %7 = arith.addf %5, %6 : vector<8x512xf32>
    %cst_7 = arith.constant 0.000000e+00 : f32
    %8 = vector.broadcast %cst_7 : f32 to vector<8x512xf32>
    %9 = arith.maximumf %7, %8 : vector<8x512xf32>
    %10 = arith.truncf %9 : vector<8x512xf32> to vector<8x512xbf16>
    %c0_8 = arith.constant 0 : index
    %c0_9 = arith.constant 0 : index
    %11 = vector.load %arg3[%c0_8, %c0_9] : memref<512x256xbf16, #tpu.memory_space<vmem>>, vector<512x256xbf16>
    %cst_10 = arith.constant dense<0.000000e+00> : vector<8x256xf32>
    %12 = tpu.matmul %10, %11, %cst_10 {dimension_numbers = #tpu.dot_dimension_numbers<[1], [0], [0], [1], [0, 0, 1, 1], [], []>} : vector<8x512xbf16>, vector<512x256xbf16>, vector<8x256xf32> -> vector<8x256xf32>
    %13 = vector.broadcast %2 : vector<1x256xf32> to vector<8x256xf32>
    %14 = arith.addf %12, %13 : vector<8x256xf32>
    %cst_11 = arith.constant 0.000000e+00 : f32
    %15 = vector.broadcast %cst_11 : f32 to vector<8x256xf32>
    %16 = arith.maximumf %14, %15 : vector<8x256xf32>
    %17 = arith.truncf %16 : vector<8x256xf32> to vector<8x256xbf16>
    %c0_12 = arith.constant 0 : index
    %c0_13 = arith.constant 0 : index
    %18 = vector.load %arg4[%c0_12, %c0_13] : memref<256x128xbf16, #tpu.memory_space<vmem>>, vector<256x128xbf16>
    %cst_14 = arith.constant dense<0.000000e+00> : vector<8x128xf32>
    %19 = tpu.matmul %17, %18, %cst_14 {dimension_numbers = #tpu.dot_dimension_numbers<[1], [0], [0], [1], [0, 0, 1, 1], [], []>} : vector<8x256xbf16>, vector<256x128xbf16>, vector<8x128xf32> -> vector<8x128xf32>
    %20 = vector.broadcast %3 : vector<1x128xf32> to vector<8x128xf32>
    %21 = arith.addf %19, %20 : vector<8x128xf32>
    %22 = math.tanh %21 : vector<8x128xf32>
    %c0_15 = arith.constant 0 : index
    %c0_16 = arith.constant 0 : index
    %23 = vector.load %arg6[%c0_15, %c0_16] : memref<8x128xf32, #tpu.memory_space<vmem>>, vector<8x128xf32>
    tpu.vector_store %arg6[%c0_15, %c0_16], %22 {strides = array<i32>} : memref<8x128xf32, #tpu.memory_space<vmem>>, vector<8x128xf32>,
    return
  }
  func.func @transform_0(%arg0: i32) -> (i32, i32) {
    %c0_i32 = arith.constant 0 : i32
    %c0_i32_0 = arith.constant 0 : i32
    return %arg0, %c0_i32 : i32, i32
  }
  func.func @transform_1(%arg0: i32) -> (i32, i32) {
    %c0_i32 = arith.constant 0 : i32
    %c0_i32_0 = arith.constant 0 : i32
    %c0_i32_1 = arith.constant 0 : i32
    return %c0_i32, %c0_i32_0 : i32, i32
  }
  func.func @transform_2(%arg0: i32) -> (i32, i32) {
    %c0_i32 = arith.constant 0 : i32
    %c0_i32_0 = arith.constant 0 : i32
    %c0_i32_1 = arith.constant 0 : i32
    return %c0_i32, %c0_i32_0 : i32, i32
  }
  func.func @transform_3(%arg0: i32) -> (i32, i32) {
    %c0_i32 = arith.constant 0 : i32
    %c0_i32_0 = arith.constant 0 : i32
    %c0_i32_1 = arith.constant 0 : i32
    return %c0_i32, %c0_i32_0 : i32, i32
  }
  func.func @transform_4(%arg0: i32) -> (i32, i32) {
    %c0_i32 = arith.constant 0 : i32
    %c0_i32_0 = arith.constant 0 : i32
    %c0_i32_1 = arith.constant 0 : i32
    return %c0_i32, %c0_i32_0 : i32, i32
  }
  func.func @transform_5(%arg0: i32) -> (i32, i32) {
    %c0_i32 = arith.constant 0 : i32
    %c0_i32_0 = arith.constant 0 : i32
    return %arg0, %c0_i32 : i32, i32
  }
}

</mosaic_0001>

<bundles_post_ra>
// kernel: tpu_custom_call.1
= control target key start
LH: loop header
LB: loop body
LE: loop exit
PB: predicated region body
PF: predicated region fallthrough
CT: control target
= control target key end

     0   :  { %10 = vsyncpa [#allocation3], 0  ;;  %s1549_s0 = inlined_call_operand.hbm [shape: bf16[8,128], index: 0, kind: input, shape index: {}]   ;;  %s1550_s1 = inlined_call_operand.hbm [shape: bf16[128,512], index: 1, kind: input, shape index: {}]   ;;  %s1551_s2 = inlined_call_operand.hbm [shape: bf16[512,256], index: 2, kind: input, shape index: {}]   ;;  %s1552_s3 = inlined_call_operand.hbm [shape: bf16[256,128], index: 3, kind: input, shape index: {}]   ;;  %s1553_s4 = inlined_call_operand.vmem [shape: f32[1,896], index: 4, kind: input, shape index: {}]   ;;  %s1554_s5 = inlined_call_operand.hbm [shape: f32[8,128], index: 5, kind: output, shape index: {}]  }
   0x1   :  { %11 = vsyncpa [#allocation6], 0 }
   0x2   :  { %12 = vsyncpa [#allocation9], 0 }
   0x3   :  { %13 = vsyncpa [#allocation4], 0  ;;  %s1473_s18 = smov [#allocation5]  }
   0x4   :  { %s29_s19 = sshll.u32 %s1473_s18, 4  ;;  %s30_s19 = int_to_ptr.vmem [resolvable:$true] %s29_s19 }
   0x5   :  { %s1373_s20 = scalar_lea.vmem %s30_s19, 4096  ;;  %p1378_p1 = scmp.lt.s32.totalorder %s30_s19, %s30_s19 }
   0x6   :  { %p1374_p0 = scmp.ne.s32.totalorder %s30_s19, %s1373_s20  ;;  %p1379_p2 = scmp.lt.s32.totalorder %s1373_s20, %s1373_s20 }
   0x8   :  { %p1380_p3 = por %p1379_p2, %p1378_p1 }
   0xa   :  { %p1381_p4 = pnand %p1380_p3, %p1374_p0 }
   0xc   :  { %1384 = shalt.err (!%p1381_p4)
}
   0xd   :  { %s1474_s21 = smov 256   ;;  %s1475_s22 = smov 16  }
   0xe   :  { %35 = dma.hbm_to_vmem [thread:$0]  %s1550_s1, 4096, %s30_s19, [#allocation6], %s1474_s21, %s1474_s21, %s1475_s22  }
   0xf   :  { %s1476_s25 = smov [#allocation2]   ;;  %s1477_s27 = smov [#allocation7]  }
  0x10   :  { %s20_s26 = sshll.u32 %s1476_s25, 4  ;;  %s41_s28 = sshll.u32 %s1477_s27, 4  ;;  %s21_s26 = int_to_ptr.vmem [resolvable:$true] %s20_s26  ;;  %s42_s28 = int_to_ptr.vmem [resolvable:$true] %s41_s28 }
  0x11   :  { %s1393_s29 = scalar_lea.vmem %s21_s26, 64  ;;  %p1398_p6 = scmp.lt.s32.totalorder %s21_s26, %s21_s26 }
  0x12   :  { %p1394_p5 = scmp.ne.s32.totalorder %s21_s26, %s1393_s29  ;;  %p1399_p7 = scmp.lt.s32.totalorder %s1393_s29, %s1393_s29 }
  0x14   :  { %p1400_p8 = por %p1399_p7, %p1398_p6 }
  0x16   :  { %p1401_p9 = pnand %p1400_p8, %p1394_p5 }
  0x18   :  { %1404 = shalt.err (!%p1401_p9)
}
  0x19   :  { %23 = dma.hbm_to_vmem [thread:$0]  %s1549_s0, 64, %s21_s26, [#allocation3]  }
  0x1a   :  { %s1413_s7 = scalar_lea.vmem %s42_s28, 8192  ;;  %p1418_p11 = scmp.lt.s32.totalorder %s42_s28, %s42_s28 }
  0x1b   :  { %p1414_p10 = scmp.ne.s32.totalorder %s42_s28, %s1413_s7  ;;  %p1419_p12 = scmp.lt.s32.totalorder %s1413_s7, %s1413_s7 }
  0x1d   :  { %p1420_p13 = por %p1419_p12, %p1418_p11 }
  0x1f   :  { %p1421_p0 = pnand %p1420_p13, %p1414_p10 }
  0x21   :  { %1424 = shalt.err (!%p1421_p0)
}
  0x22   :  { %s1478_s1 = smov 128   ;;  %s1479_s8 = smov 8  }
  0x23   :  { %47 = dma.hbm_to_vmem [thread:$0]  %s1551_s2, 8192, %s42_s28, [#allocation6], %s1478_s1, %s1478_s1, %s1479_s8  }
  0x24   :  { %s1480_s11 = smov [#allocation8]  }
  0x25   :  { %s53_s12 = sshll.u32 %s1480_s11, 4  ;;  %s54_s12 = int_to_ptr.vmem [resolvable:$true] %s53_s12 }
  0x26   :  { %s1433_s13 = scalar_lea.vmem %s54_s12, 2048  ;;  %p1438_p2 = scmp.lt.s32.totalorder %s54_s12, %s54_s12 }
  0x27   :  { %p1434_p1 = scmp.ne.s32.totalorder %s54_s12, %s1433_s13  ;;  %p1439_p3 = scmp.lt.s32.totalorder %s1433_s13, %s1433_s13 }
  0x29   :  { %p1440_p4 = por %p1439_p3, %p1438_p2 }
  0x2b   :  { %p1441_p5 = pnand %p1440_p4, %p1434_p1 }
  0x2d   :  { %1444 = shalt.err (!%p1441_p5)
}
  0x2e   :  { %s1481_s0 = smov 64   ;;  %s1482_s14 = smov 4  }
  0x2f   :  { %59 = dma.hbm_to_vmem [thread:$0]  %s1552_s3, 2048, %s54_s12, [#allocation9], %s1481_s0, %s1481_s0, %s1482_s14  }
  0x30   :  { %1465 = dma.done.wait [#allocation3], 64  }
  0x31   :  { %1466 = vsyncadd [#allocation3], 4294967232 }
  0x32   :  { %1467 = dma.done.wait [#allocation6], 12288  }
  0x33   :  { %1468 = vsyncadd [#allocation6], 4294955008 }
  0x34   :  { %1469 = dma.done.wait [#allocation9], 2048  }
  0x35   :  { %1470 = vsyncadd [#allocation9], 4294965248  ;;  %v1483_v0 = vmov 0   ;;  %v1203_v1 = vld [vmem:[#allocation5 + $0xe4] ss:$16 sps:$4 sm:$0xff]   ;;  %s1484_s21 = smov [#allocation10]  }
  0x36   :  { %324 = vmatprep.mubr.bf16.mxu0 %v1483_v0  ;;  %365 = vmatprep.mubr.bf16.mxu1 %v1483_v0  ;;  %v1205_v2 = vld [vmem:[#allocation5 + $0xec] ss:$16 sps:$4 sm:$0xff]   ;;  %v1207_v3 = vld [vmem:[#allocation5 + $0xe0] ss:$16 sps:$4 sm:$0xff]   ;;  %v1208_v4 = vld [vmem:[#allocation5 + $0xe8] ss:$16 sps:$4 sm:$0xff]  }
  0x37   :  { %292 = vmatprep.subr.bf16.mxu0 %v1203_v1  ;;  %333 = vmatprep.subr.bf16.mxu1 %v1205_v2  ;;  %v1209_v5 = vld [vmem:[#allocation5 + $0xc4] ss:$16 sps:$4 sm:$0xff]   ;;  %v1211_v6 = vld [vmem:[#allocation5 + $0xcc] ss:$16 sps:$4 sm:$0xff]   ;;  %v1213_v7 = vld [vmem:[#allocation5 + $0xc0] ss:$16 sps:$4 sm:$0xff]  }
  0x38   :  { %293 = vmatpush1.bf16.msra.mxu0 %v1207_v3  ;;  %334 = vmatpush1.bf16.msra.mxu1 %v1208_v4  ;;  %v1214_v8 = vld [vmem:[#allocation5 + $0xc8] ss:$16 sps:$4 sm:$0xff]   ;;  %v1215_v9 = vld [vmem:[#allocation5 + $0xa4] ss:$16 sps:$4 sm:$0xff]   ;;  %v1217_v10 = vld [vmem:[#allocation5 + $0xac] ss:$16 sps:$4 sm:$0xff]  }
  0x39   :  { %294 = vmatprep.subr.bf16.mxu0 %v1209_v5  ;;  %335 = vmatprep.subr.bf16.mxu1 %v1211_v6  ;;  %v1219_v11 = vld [vmem:[#allocation5 + $0xa0] ss:$16 sps:$4 sm:$0xff]   ;;  %v1220_v12 = vld [vmem:[#allocation5 + $0xa8] ss:$16 sps:$4 sm:$0xff]   ;;  %v1221_v13 = vld [vmem:[#allocation5 + $0x84] ss:$16 sps:$4 sm:$0xff]  }
  0x3a   :  { %v1223_v14 = vld [vmem:[#allocation5 + $0x8c] ss:$16 sps:$4 sm:$0xff]   ;;  %v1225_v15 = vld [vmem:[#allocation5 + $0x80] ss:$16 sps:$4 sm:$0xff]   ;;  %v1226_v16 = vld [vmem:[#allocation5 + $0x88] ss:$16 sps:$4 sm:$0xff]  }
  0x3b   :  { %v1227_v17 = vld [vmem:[#allocation5 + $0x64] ss:$16 sps:$4 sm:$0xff]   ;;  %v1229_v18 = vld [vmem:[#allocation5 + $0x6c] ss:$16 sps:$4 sm:$0xff]   ;;  %v1231_v19 = vld [vmem:[#allocation5 + $0x60] ss:$16 sps:$4 sm:$0xff]  }
  0x3c   :  { %295 = vmatpush1.bf16.msra.mxu0 %v1213_v7  ;;  %336 = vmatpush1.bf16.msra.mxu1 %v1214_v8  ;;  %v1232_v20 = vld [vmem:[#allocation5 + $0x68] ss:$16 sps:$4 sm:$0xff]   ;;  %v1233_v21 = vld [vmem:[#allocation5 + $0x44] ss:$16 sps:$4 sm:$0xff]   ;;  %v1235_v22 = vld [vmem:[#allocation5 + $0x4c] ss:$16 sps:$4 sm:$0xff]  }
  0x3d   :  { %296 = vmatprep.subr.bf16.mxu0 %v1215_v9  ;;  %337 = vmatprep.subr.bf16.mxu1 %v1217_v10  ;;  %v1237_v23 = vld [vmem:[#allocation5 + $0x40] ss:$16 sps:$4 sm:$0xff]   ;;  %v1238_v24 = vld [vmem:[#allocation5 + $0x48] ss:$16 sps:$4 sm:$0xff]   ;;  %v1239_v25 = vld [vmem:[#allocation5 + $0x24] ss:$16 sps:$4 sm:$0xff]  }
  0x3e   :  { %v1241_v26 = vld [vmem:[#allocation5 + $0x2c] ss:$16 sps:$4 sm:$0xff]   ;;  %v1243_v27 = vld [vmem:[#allocation5 + $0x20] ss:$16 sps:$4 sm:$0xff]   ;;  %v1244_v28 = vld [vmem:[#allocation5 + $0x28] ss:$16 sps:$4 sm:$0xff]  }
  0x3f   :  { %v1245_v29 = vld [vmem:[#allocation5 + $0x4] ss:$16 sps:$4 sm:$0xff]   ;;  %v1247_v30 = vld [vmem:[#allocation5 + $0xc] ss:$16 sps:$4 sm:$0xff]   ;;  %v1249_v31 = vld [vmem:[#allocation5] ss:$16 sps:$4 sm:$0xff]  }
  0x40   :  { %297 = vmatpush1.bf16.msra.mxu0 %v1219_v11  ;;  %338 = vmatpush1.bf16.msra.mxu1 %v1220_v12  ;;  %v1250_v32 = vld [vmem:[#allocation5 + $0x8] ss:$16 sps:$4 sm:$0xff]   ;;  %v1253_v33 = vld [vmem:[#allocation7 + $0x74] ss:$8 sps:$4 sm:$0xff]   ;;  %v1259_v38 = vld [vmem:[#allocation7 + $0x64] ss:$8 sps:$4 sm:$0xff]  }
  0x41   :  { %298 = vmatprep.subr.bf16.mxu0 %v1221_v13  ;;  %339 = vmatprep.subr.bf16.mxu1 %v1223_v14  ;;  %v1256_v34 = vld [vmem:[#allocation7 + $0x174] ss:$8 sps:$4 sm:$0xff]   ;;  %v1251_v36 = vld [vmem:[#allocation7 + $0x70] ss:$8 sps:$4 sm:$0xff]   ;;  %v1262_v39 = vld [vmem:[#allocation7 + $0x164] ss:$8 sps:$4 sm:$0xff]  }
  0x42   :  { %v75_v35 = vld [vmem:[#allocation2] sm:$0xf]  ;;  %v1254_v37 = vld [vmem:[#allocation7 + $0x170] ss:$8 sps:$4 sm:$0xff]   ;;  %v1257_v40 = vld [vmem:[#allocation7 + $0x60] ss:$8 sps:$4 sm:$0xff]  }
  0x43   :  { %v1260_v41 = vld [vmem:[#allocation7 + $0x160] ss:$8 sps:$4 sm:$0xff]   ;;  %v1265_v42 = vld [vmem:[#allocation7 + $0x54] ss:$8 sps:$4 sm:$0xff]   ;;  %v1263_v44 = vld [vmem:[#allocation7 + $0x50] ss:$8 sps:$4 sm:$0xff]  }
  0x44   :  { %299 = vmatpush1.bf16.msra.mxu0 %v1225_v15  ;;  %340 = vmatpush1.bf16.msra.mxu1 %v1226_v16  ;;  %v1268_v43 = vld [vmem:[#allocation7 + $0x154] ss:$8 sps:$4 sm:$0xff]   ;;  %v1266_v45 = vld [vmem:[#allocation7 + $0x150] ss:$8 sps:$4 sm:$0xff]   ;;  %v1271_v46 = vld [vmem:[#allocation7 + $0x44] ss:$8 sps:$4 sm:$0xff]  }
  0x45   :  { %300 = vmatprep.subr.bf16.mxu0 %v1227_v17  ;;  %341 = vmatprep.subr.bf16.mxu1 %v1229_v18  ;;  %v1274_v47 = vld [vmem:[#allocation7 + $0x144] ss:$8 sps:$4 sm:$0xff]   ;;  %v1269_v48 = vld [vmem:[#allocation7 + $0x40] ss:$8 sps:$4 sm:$0xff]   ;;  %v1277_v50 = vld [vmem:[#allocation7 + $0x34] ss:$8 sps:$4 sm:$0xff]  }
  0x46   :  { %v1272_v49 = vld [vmem:[#allocation7 + $0x140] ss:$8 sps:$4 sm:$0xff]   ;;  %v1280_v51 = vld [vmem:[#allocation7 + $0x134] ss:$8 sps:$4 sm:$0xff]   ;;  %v1275_v52 = vld [vmem:[#allocation7 + $0x30] ss:$8 sps:$4 sm:$0xff]  }
  0x47   :  { %v1278_v53 = vld [vmem:[#allocation7 + $0x130] ss:$8 sps:$4 sm:$0xff]   ;;  %v1283_v54 = vld [vmem:[#allocation7 + $0x24] ss:$8 sps:$4 sm:$0xff]   ;;  %v1281_v56 = vld [vmem:[#allocation7 + $0x20] ss:$8 sps:$4 sm:$0xff]  }
  0x48   :  { %301 = vmatpush1.bf16.msra.mxu0 %v1231_v19  ;;  %342 = vmatpush1.bf16.msra.mxu1 %v1232_v20  ;;  %v1286_v55 = vld [vmem:[#allocation7 + $0x124] ss:$8 sps:$4 sm:$0xff]   ;;  %v1284_v57 = vld [vmem:[#allocation7 + $0x120] ss:$8 sps:$4 sm:$0xff]   ;;  %v1289_v58 = vld [vmem:[#allocation7 + $0x14] ss:$8 sps:$4 sm:$0xff]  }
  0x49   :  { %302 = vmatprep.subr.bf16.mxu0 %v1233_v21  ;;  %343 = vmatprep.subr.bf16.mxu1 %v1235_v22  ;;  %v1292_v59 = vld [vmem:[#allocation7 + $0x114] ss:$8 sps:$4 sm:$0xff]   ;;  %v1287_v60 = vld [vmem:[#allocation7 + $0x10] ss:$8 sps:$4 sm:$0xff]   ;;  %v1295_v62 = vld [vmem:[#allocation7 + $0x4] ss:$8 sps:$4 sm:$0xff]  }
  0x4a   :  { %v1290_v61 = vld [vmem:[#allocation7 + $0x110] ss:$8 sps:$4 sm:$0xff]   ;;  %v1298_v63 = vld [vmem:[#allocation7 + $0x104] ss:$8 sps:$4 sm:$0xff]   ;;  %v1293_v0 = vld [vmem:[#allocation7] ss:$8 sps:$4 sm:$0xff]  }
  0x4b   :  { %v1296_v1 = vld [vmem:[#allocation7 + $0x100] ss:$8 sps:$4 sm:$0xff]   ;;  %v1301_v2 = vld [vmem:[#allocation7 + $0xf4] ss:$8 sps:$4 sm:$0xff]   ;;  %v1299_v4 = vld [vmem:[#allocation7 + $0xf0] ss:$8 sps:$4 sm:$0xff]  }
  0x4c   :  { %303 = vmatpush1.bf16.msra.mxu0 %v1237_v23  ;;  %344 = vmatpush1.bf16.msra.mxu1 %v1238_v24  ;;  %v1304_v3 = vld [vmem:[#allocation7 + $0x1f4] ss:$8 sps:$4 sm:$0xff]   ;;  %v1302_v5 = vld [vmem:[#allocation7 + $0x1f0] ss:$8 sps:$4 sm:$0xff]   ;;  %v1307_v6 = vld [vmem:[#allocation7 + $0xe4] ss:$8 sps:$4 sm:$0xff]  }
  0x4d   :  { %304 = vmatprep.subr.bf16.mxu0 %v1239_v25  ;;  %345 = vmatprep.subr.bf16.mxu1 %v1241_v26  ;;  %v1310_v7 = vld [vmem:[#allocation7 + $0x1e4] ss:$8 sps:$4 sm:$0xff]   ;;  %v1305_v8 = vld [vmem:[#allocation7 + $0xe0] ss:$8 sps:$4 sm:$0xff]   ;;  %v1313_v10 = vld [vmem:[#allocation7 + $0xd4] ss:$8 sps:$4 sm:$0xff]  }
  0x4e   :  { %v1308_v9 = vld [vmem:[#allocation7 + $0x1e0] ss:$8 sps:$4 sm:$0xff]   ;;  %v1316_v11 = vld [vmem:[#allocation7 + $0x1d4] ss:$8 sps:$4 sm:$0xff]   ;;  %v1311_v12 = vld [vmem:[#allocation7 + $0xd0] ss:$8 sps:$4 sm:$0xff]  }
  0x4f   :  { %v1314_v13 = vld [vmem:[#allocation7 + $0x1d0] ss:$8 sps:$4 sm:$0xff]   ;;  %v1319_v14 = vld [vmem:[#allocation7 + $0xc4] ss:$8 sps:$4 sm:$0xff]   ;;  %v1317_v16 = vld [vmem:[#allocation7 + $0xc0] ss:$8 sps:$4 sm:$0xff]  }
  0x50   :  { %305 = vmatpush1.bf16.msra.mxu0 %v1243_v27  ;;  %346 = vmatpush1.bf16.msra.mxu1 %v1244_v28  ;;  %v1322_v15 = vld [vmem:[#allocation7 + $0x1c4] ss:$8 sps:$4 sm:$0xff]   ;;  %v1320_v17 = vld [vmem:[#allocation7 + $0x1c0] ss:$8 sps:$4 sm:$0xff]   ;;  %v1325_v18 = vld [vmem:[#allocation7 + $0xb4] ss:$8 sps:$4 sm:$0xff]  }
  0x51   :  { %306 = vmatprep.subr.bf16.mxu0 %v1245_v29  ;;  %347 = vmatprep.subr.bf16.mxu1 %v1247_v30  ;;  %v1328_v19 = vld [vmem:[#allocation7 + $0x1b4] ss:$8 sps:$4 sm:$0xff]   ;;  %v1323_v20 = vld [vmem:[#allocation7 + $0xb0] ss:$8 sps:$4 sm:$0xff]   ;;  %v1331_v22 = vld [vmem:[#allocation7 + $0xa4] ss:$8 sps:$4 sm:$0xff]  }
  0x52   :  { %v1326_v21 = vld [vmem:[#allocation7 + $0x1b0] ss:$8 sps:$4 sm:$0xff]   ;;  %v1334_v23 = vld [vmem:[#allocation7 + $0x1a4] ss:$8 sps:$4 sm:$0xff]   ;;  %v1329_v24 = vld [vmem:[#allocation7 + $0xa0] ss:$8 sps:$4 sm:$0xff]  }
  0x53   :  { %v1332_v25 = vld [vmem:[#allocation7 + $0x1a0] ss:$8 sps:$4 sm:$0xff]   ;;  %v1337_v26 = vld [vmem:[#allocation7 + $0x94] ss:$8 sps:$4 sm:$0xff]   ;;  %v1335_v28 = vld [vmem:[#allocation7 + $0x90] ss:$8 sps:$4 sm:$0xff]  }
  0x54   :  { %307 = vmatpush1.bf16.msra.mxu0 %v1249_v31  ;;  %348 = vmatpush1.bf16.msra.mxu1 %v1250_v32  ;;  %v1340_v27 = vld [vmem:[#allocation7 + $0x194] ss:$8 sps:$4 sm:$0xff]   ;;  %v1338_v29 = vld [vmem:[#allocation7 + $0x190] ss:$8 sps:$4 sm:$0xff]   ;;  %v1343_v30 = vld [vmem:[#allocation7 + $0x84] ss:$8 sps:$4 sm:$0xff]  }
  0x55   :  { %777 = vmatprep.subr.bf16.mxu0 %v1253_v33  ;;  %818 = vmatprep.subr.bf16.mxu1 %v1256_v34  ;;  %v1346_v31 = vld [vmem:[#allocation7 + $0x184] ss:$8 sps:$4 sm:$0xff]   ;;  %v1341_v32 = vld [vmem:[#allocation7 + $0x80] ss:$8 sps:$4 sm:$0xff]   ;;  %v1347_v34 = vld [vmem:[#allocation8 + $0x78] sm:$0xff]   ;;  %s1045_s22 = sshll.u32 %s1484_s21, 4  ;;  %s1046_s22 = int_to_ptr.vmem [resolvable:$true] %s1045_s22 }
  0x56   :  { %v1344_v33 = vld [vmem:[#allocation7 + $0x180] ss:$8 sps:$4 sm:$0xff]   ;;  %s1445_s23 = scalar_lea.vmem %s1046_s22, 128  ;;  %p1450_p7 = scmp.lt.s32.totalorder %s1046_s22, %s1046_s22 }
  0x57   :  { %325 = vmatmul.mubr.bf16.vlgmr.msra.gmra.mxu0 %v75_v35  ;;  %366 = vmatmul.mubr.bf16.vlgmr.msra.gmra.mxu1 %v75_v35  ;;  %v112_v35 = vlaneseq  ;;  %p1446_p6 = scmp.ne.s32.totalorder %s1046_s22, %s1445_s23  ;;  %p1451_p8 = scmp.lt.s32.totalorder %s1445_s23, %s1445_s23 }
  0x58   :  { %778 = vmatpush1.bf16.msra.mxu0 %v1251_v36  ;;  %819 = vmatpush1.bf16.msra.mxu1 %v1254_v37 }
  0x59   :  { %779 = vmatprep.subr.bf16.mxu0 %v1259_v38  ;;  %820 = vmatprep.subr.bf16.mxu1 %v1262_v39  ;;  %v1527_v36 = vshrl.u32 %v112_v35, 7  ;;  %v76_v39 = vld [vmem:[%s1553_s4] sm:$0xf]  ;;  %p1452_p9 = por %p1451_p8, %p1450_p7 }
  0x5b   :  { %v114_v37 = vsub.s32 0, %v1527_v36  ;;  %v122_v38 = vsub.s32 2, %v1527_v36  ;;  %p1453_p10 = pnand %p1452_p9, %p1446_p6 }
  0x5c   :  { %780 = vmatpush1.bf16.msra.mxu0 %v1257_v40  ;;  %821 = vmatpush1.bf16.msra.mxu1 %v1260_v41  ;;  %v118_v40 = vsub.s32 1, %v1527_v36  ;;  %v126_v41 = vsub.s32 3, %v1527_v36 }
  0x5d   :  { %781 = vmatprep.subr.bf16.mxu0 %v1265_v42  ;;  %822 = vmatprep.subr.bf16.mxu1 %v1268_v43  ;;  %v115_v42 = vrot.slane %v76_v39, %v114_v37  ;;  %v123_v43 = vrot.slane %v76_v39, %v122_v38 }
  0x60   :  { %782 = vmatpush1.bf16.msra.mxu0 %v1263_v44  ;;  %823 = vmatpush1.bf16.msra.mxu1 %v1266_v45  ;;  %v119_v44 = vrot.slane %v76_v39, %v118_v40  ;;  %v127_v45 = vrot.slane %v76_v39, %v126_v41 }
  0x61   :  { %783 = vmatprep.subr.bf16.mxu0 %v1271_v46  ;;  %824 = vmatprep.subr.bf16.mxu1 %v1274_v47 }
  0x64   :  { %784 = vmatpush1.bf16.msra.mxu0 %v1269_v48  ;;  %825 = vmatpush1.bf16.msra.mxu1 %v1272_v49 }
  0x65   :  { %785 = vmatprep.subr.bf16.mxu0 %v1277_v50  ;;  %826 = vmatprep.subr.bf16.mxu1 %v1280_v51 }
  0x68   :  { %786 = vmatpush1.bf16.msra.mxu0 %v1275_v52  ;;  %827 = vmatpush1.bf16.msra.mxu1 %v1278_v53 }
  0x69   :  { %787 = vmatprep.subr.bf16.mxu0 %v1283_v54  ;;  %828 = vmatprep.subr.bf16.mxu1 %v1286_v55 }
  0x6c   :  { %788 = vmatpush1.bf16.msra.mxu0 %v1281_v56  ;;  %829 = vmatpush1.bf16.msra.mxu1 %v1284_v57 }
  0x6d   :  { %789 = vmatprep.subr.bf16.mxu0 %v1289_v58  ;;  %830 = vmatprep.subr.bf16.mxu1 %v1292_v59 }
  0x70   :  { %790 = vmatpush1.bf16.msra.mxu0 %v1287_v60  ;;  %831 = vmatpush1.bf16.msra.mxu1 %v1290_v61 }
  0x71   :  { %791 = vmatprep.subr.bf16.mxu0 %v1295_v62  ;;  %832 = vmatprep.subr.bf16.mxu1 %v1298_v63 }
  0x74   :  { %792 = vmatpush1.bf16.msra.mxu0 %v1293_v0  ;;  %833 = vmatpush1.bf16.msra.mxu1 %v1296_v1  ;;  %v1348_v1 = vld [vmem:[#allocation8 + $0x38] sm:$0xff]  }
  0x75   :  { %793 = vmatprep.subr.bf16.mxu0 %v1301_v2  ;;  %834 = vmatprep.subr.bf16.mxu1 %v1304_v3  ;;  %v1349_v3 = vld [vmem:[#allocation8 + $0x70] sm:$0xff]  }
  0x78   :  { %794 = vmatpush2.bf16.msra.mxu0 %v1299_v4  ;;  %835 = vmatpush2.bf16.msra.mxu1 %v1302_v5  ;;  %v1350_v4 = vld [vmem:[#allocation8 + $0x30] sm:$0xff]   ;;  %v1351_v5 = vld [vmem:[#allocation8 + $0x68] sm:$0xff]  }
  0x79   :  { %795 = vmatprep.subr.bf16.mxu0 %v1307_v6  ;;  %836 = vmatprep.subr.bf16.mxu1 %v1310_v7  ;;  %v1352_v6 = vld [vmem:[#allocation8 + $0x28] sm:$0xff]   ;;  %v1353_v7 = vld [vmem:[#allocation8 + $0x60] sm:$0xff]  }
  0x7c   :  { %796 = vmatpush2.bf16.msra.mxu0 %v1305_v8  ;;  %837 = vmatpush2.bf16.msra.mxu1 %v1308_v9  ;;  %v1354_v8 = vld [vmem:[#allocation8 + $0x20] sm:$0xff]   ;;  %v1355_v9 = vld [vmem:[#allocation8 + $0x58] sm:$0xff]  }
  0x7d   :  { %797 = vmatprep.subr.bf16.mxu0 %v1313_v10  ;;  %838 = vmatprep.subr.bf16.mxu1 %v1316_v11  ;;  %v1356_v10 = vld [vmem:[#allocation8 + $0x18] sm:$0xff]   ;;  %v1357_v11 = vld [vmem:[#allocation8 + $0x50] sm:$0xff]  }
  0x80   :  { %798 = vmatpush2.bf16.msra.mxu0 %v1311_v12  ;;  %839 = vmatpush2.bf16.msra.mxu1 %v1314_v13  ;;  %v1358_v12 = vld [vmem:[#allocation8 + $0x10] sm:$0xff]   ;;  %v1359_v13 = vld [vmem:[#allocation8 + $0x48] sm:$0xff]  }
  0x81   :  { %799 = vmatprep.subr.bf16.mxu0 %v1319_v14  ;;  %840 = vmatprep.subr.bf16.mxu1 %v1322_v15  ;;  %v1360_v14 = vld [vmem:[#allocation8 + $0x8] sm:$0xff]   ;;  %v1361_v15 = vld [vmem:[#allocation8 + $0x40] sm:$0xff]  }
  0x84   :  { %800 = vmatpush2.bf16.msra.mxu0 %v1317_v16  ;;  %841 = vmatpush2.bf16.msra.mxu1 %v1320_v17  ;;  %v1362_v16 = vld [vmem:[#allocation8] sm:$0xff]  }
  0x85   :  { %801 = vmatprep.subr.bf16.mxu0 %v1325_v18  ;;  %842 = vmatprep.subr.bf16.mxu1 %v1328_v19  ;;  %v77_v17 = vld [vmem:[%s1553_s4 + $0x4] sm:$0x3] }
  0x86   :  { %v450_v18 = vrot.slane %v77_v17, %v114_v37  ;;  %v454_v19 = vrot.slane %v77_v17, %v118_v40  ;;  %v1152_v37 = vld [vmem:[%s1553_s4 + $0x6] ss:$0 sm:$0xff] }
  0x88   :  { %802 = vmatpush2.bf16.msra.mxu0 %v1323_v20  ;;  %843 = vmatpush2.bf16.msra.mxu1 %v1326_v21 }
  0x89   :  { %803 = vmatprep.subr.bf16.mxu0 %v1331_v22  ;;  %844 = vmatprep.subr.bf16.mxu1 %v1334_v23 }
  0x8c   :  { %804 = vmatpush2.bf16.msra.mxu0 %v1329_v24  ;;  %845 = vmatpush2.bf16.msra.mxu1 %v1332_v25 }
  0x8d   :  { %805 = vmatprep.subr.bf16.mxu0 %v1337_v26  ;;  %846 = vmatprep.subr.bf16.mxu1 %v1340_v27 }
  0x90   :  { %806 = vmatpush2.bf16.msra.mxu0 %v1335_v28  ;;  %847 = vmatpush2.bf16.msra.mxu1 %v1338_v29 }
  0x91   :  { %807 = vmatprep.subr.bf16.mxu0 %v1343_v30  ;;  %848 = vmatprep.subr.bf16.mxu1 %v1346_v31 }
  0x94   :  { %808 = vmatpush2.bf16.msra.mxu0 %v1341_v32  ;;  %849 = vmatpush2.bf16.msra.mxu1 %v1344_v33 }
  0x95   :  { %1169 = vmatprep.subr.bf16.mxu0 %v1347_v34 }
 0x117   :  { %v326_v46 = vpop.f32.mrf.mxu0  ;;  %v367_v47 = vpop.f32.mrf.mxu1 }
 0x118   :  { %v327_v48 = vadd.f32 %v326_v46, %v115_v42  ;;  %v368_v49 = vadd.f32 %v367_v47, %v123_v43 }
 0x119   :  { %v328_v50 = vpop.f32.mrf.mxu0  ;;  %v369_v51 = vpop.f32.mrf.mxu1 }
 0x11a   :  { %v376_v52 = vmax.f32 %v368_v49, 0.0  ;;  %v329_v53 = vadd.f32 %v328_v50, %v119_v44  ;;  %v370_v54 = vadd.f32 %v369_v51, %v127_v45  ;;  %v374_v55 = vmax.f32 %v327_v48, 0.0 }
 0x11b   :  { %v330_v56 = vpop.f32.mrf.mxu0  ;;  %v371_v57 = vpop.f32.mrf.mxu1 }
 0x11c   :  { %v375_v58 = vmax.f32 %v329_v53, 0.0  ;;  %v377_v59 = vmax.f32 %v370_v54, 0.0  ;;  %v380_v60 = vpack.c.bf16 %v376_v52, %v376_v52  ;;  %v378_v2 = vpack.c.bf16 %v374_v55, %v374_v55 }
 0x11d   :  { %v331_v61 = vpop.f32.mrf.mxu0  ;;  %v372_v62 = vpop.f32.mrf.mxu1 }
 0x11e   :  { %v379_v63 = vpack.c.bf16 %v375_v58, %v375_v58  ;;  %v381_v0 = vpack.c.bf16 %v377_v59, %v377_v59 }
 0x120   :  { %809 = vmatprep.mubr.bf16.mxu0 %v379_v63  ;;  %850 = vmatprep.mubr.bf16.mxu1 %v381_v0 }
 0x121   :  { %810 = vmatmul.mubr.bf16.vlgmr.msra.gmra.mxu0 %v378_v2  ;;  %851 = vmatmul.mubr.bf16.vlgmr.msra.gmra.mxu1 %v380_v60 }
 0x122   :  { %1170 = vmatpush3.bf16.msra.mxu0 %v1348_v1 }
 0x123   :  { %1171 = vmatprep.subr.bf16.mxu0 %v1349_v3 }
 0x126   :  { %1172 = vmatpush3.bf16.msra.mxu0 %v1350_v4 }
 0x127   :  { %1173 = vmatprep.subr.bf16.mxu0 %v1351_v5 }
 0x12a   :  { %1174 = vmatpush3.bf16.msra.mxu0 %v1352_v6 }
 0x12b   :  { %1175 = vmatprep.subr.bf16.mxu0 %v1353_v7 }
 0x12e   :  { %1176 = vmatpush3.bf16.msra.mxu0 %v1354_v8 }
 0x12f   :  { %1177 = vmatprep.subr.bf16.mxu0 %v1355_v9 }
 0x132   :  { %1178 = vmatpush3.bf16.msra.mxu0 %v1356_v10 }
 0x133   :  { %1179 = vmatprep.subr.bf16.mxu0 %v1357_v11 }
 0x136   :  { %1180 = vmatpush3.bf16.msra.mxu0 %v1358_v12 }
 0x137   :  { %1181 = vmatprep.subr.bf16.mxu0 %v1359_v13 }
 0x13a   :  { %1182 = vmatpush3.bf16.msra.mxu0 %v1360_v14 }
 0x13b   :  { %1183 = vmatprep.subr.bf16.mxu0 %v1361_v15 }
 0x13e   :  { %1184 = vmatpush3.bf16.msra.mxu0 %v1362_v16 }
 0x1e1   :  { %v811_v20 = vpop.f32.mrf.mxu0  ;;  %v852_v21 = vpop.f32.mrf.mxu1 }
 0x1e2   :  { %v812_v22 = vadd.f32 %v811_v20, %v450_v18 }
 0x1e3   :  { %v813_v23 = vpop.f32.mrf.mxu0  ;;  %v854_v24 = vpop.f32.mrf.mxu1 }
 0x1e4   :  { %v853_v25 = vadd.f32 %v852_v21, %v812_v22  ;;  %v814_v26 = vadd.f32 %v813_v23, %v454_v19 }
 0x1e5   :  { %v815_v27 = vpop.f32.mrf.mxu0  ;;  %v856_v28 = vpop.f32.mrf.mxu1 }
 0x1e6   :  { %v855_v29 = vadd.f32 %v854_v24, %v814_v26  ;;  %v859_v30 = vmax.f32 %v853_v25, 0.0 }
 0x1e7   :  { %v816_v31 = vpop.f32.mrf.mxu0  ;;  %v857_v32 = vpop.f32.mrf.mxu1 }
 0x1e8   :  { %v860_v33 = vmax.f32 %v855_v29, 0.0  ;;  %v861_v35 = vpack.c.bf16 %v859_v30, %v859_v30 }
 0x1ea   :  { %v862_v34 = vpack.c.bf16 %v860_v33, %v860_v33 }
 0x1ec   :  { %1029 = vmatprep.mubr.bf16.mxu0 %v862_v34 }
 0x1ed   :  { %1030 = vmatmul.mubr.bf16.vlgmr.msra.gmra.mxu0 %v861_v35 }
 0x2ad   :  { %v1185_v36 = vpop.f32.mrf.mxu0 }
 0x2af   :  { %v1186_v38 = vpop.f32.mrf.mxu0 }
 0x2b0   :  { %v1187_v39 = vadd.f32 %v1186_v38, %v1185_v36 }
 0x2b1   :  { %v1188_v40 = vpop.f32.mrf.mxu0 }
 0x2b2   :  { %v1032_v41 = vadd.f32 %v1187_v39, %v1152_v37 }
 0x2b3   :  { %v1189_v42 = vpop.f32.mrf.mxu0 }
 0x2b4   :  { %1363 = vtanh.f32 %v1032_v41 }
 0x2c1   :  { %v1364_v43 = vpop.eup %1363 }
 0x2c2   :  { %1038 = vst [vmem:[#allocation10] sm:$0xff] %v1364_v43 }
 0x2c3   :  { %1456 = shalt.err (!%p1453_p10)
}
 0x2c4   :  { %1048 = dma.vmem_to_hbm [thread:$0]  %s1046_s22, 128, %s1554_s5, [#allocation4]  }
 0x2c5   :  { %1471 = dma.done.wait [#allocation4], 128  }
 0x2c6   :  { %1472 = vsyncadd [#allocation4], 4294967168 }
 0x2c7   :  { %1052 = vsyncpa [#allocation3], 1 }
 0x2c8   :  { %1053 = vsyncpa [#allocation6], 1 }
 0x2c9   :  { %1054 = vsyncpa [#allocation9], 1 }
 0x2ca   :  { %1055 = vsyncpa [#allocation4], 1 }

</bundles_post_ra>
